<compile_context>
chip_gen: v7x
topology: tpu7x:2x2x1
jax: 0.10.0
libtpu: 0.0.40
codegen_flags: <defaults>
</compile_context>

<pallas_src>
import functools
import math

import jax
import jax.numpy as jnp
from jax.experimental import pallas as pl
from jax.experimental.pallas import tpu as pltpu

HIDDEN = 64
FUSED = 2 * HIDDEN            # actor | critic lanes side by side = 128
MISC_ROWS = 8                 # b1, b2, b3, log_std, inv_var, std, lp_const (+1 pad)
EVAL_OUT_W = 8                # [logp | value | pad] lanes
_LOG_SQRT_2PI = 0.5 * math.log(2.0 * math.pi)
_MAX_TILE_B = 2048            # larger tiles amortize the ~0.35us/grid-step overhead
_MIN_SPLIT_B = 512            # force >=2 grid steps for v7x's two TensorCores


def _round_up(x, m):
    return ((x + m - 1) // m) * m


def _tiling(b):
    """Pick (tile_b, b_pad): minimal padding; >=2 tiles once the batch is large."""
    n = max(1, -(-b // _MAX_TILE_B))
    if n < 2 and b >= _MIN_SPLIT_B:
        n = 2                                   # let v7x shard across both TCs
    tile_b = _round_up(-(-b // n), 8)
    return tile_b, tile_b * n


# ---------------------------------------------------------------------------
# Host-side parameter packing.  Call ONCE per optimizer step, reuse across all
# act / evaluate minibatch calls.
# ---------------------------------------------------------------------------
def pack_params(params, state_dim, action_dim):
    """Returns (weights bf16 (in_w + 256, 128), misc f32 (8, 128)).

    Weight-buffer rows:
        [0, in_w)              W1 = [aw1 | cw1]   (rows >= state_dim are zero, so
                                                   the action/noise input columns
                                                   contribute exactly nothing)
        [in_w, in_w+128)       W2 = blockdiag(aw2, cw2)
        [in_w+128, in_w+256)   W3 = [aw3 -> lanes 0..A-1 ; cw3 -> lane A]
    misc rows: b1, b2, b3, log_std, exp(-2*log_std), exp(log_std),
               lp_const = sum(log_std) + A*log(sqrt(2*pi)) at [6, 0].
    """
    assert action_dim + 2 <= FUSED, "action_dim too large for lane-packed layout"
    in_w = _round_up(max(state_dim + action_dim, 16), 16)   # 16: bf16 sublane tile
    f32 = jnp.float32

    w1 = jnp.zeros((in_w, FUSED), f32)
    w1 = w1.at[:state_dim, :HIDDEN].set(params["aw1"])
    w1 = w1.at[:state_dim, HIDDEN:].set(params["cw1"])

    w2 = jnp.zeros((FUSED, FUSED), f32)
    w2 = w2.at[:HIDDEN, :HIDDEN].set(params["aw2"])
    w2 = w2.at[HIDDEN:, HIDDEN:].set(params["cw2"])

    w3 = jnp.zeros((FUSED, FUSED), f32)
    w3 = w3.at[:HIDDEN, :action_dim].set(params["aw3"])
    w3 = w3.at[HIDDEN:, action_dim:action_dim + 1].set(params["cw3"])

    weights = jnp.concatenate([w1, w2, w3], axis=0).astype(jnp.bfloat16)

    log_std = params["log_std"][0]
    misc = jnp.zeros((MISC_ROWS, FUSED), f32)
    misc = misc.at[0, :HIDDEN].set(params["ab1"][0])
    misc = misc.at[0, HIDDEN:].set(params["cb1"][0])
    misc = misc.at[1, :HIDDEN].set(params["ab2"][0])
    misc = misc.at[1, HIDDEN:].set(params["cb2"][0])
    misc = misc.at[2, :action_dim].set(params["ab3"][0])
    misc = misc.at[2, action_dim].set(params["cb3"][0, 0])
    misc = misc.at[3, :action_dim].set(log_std)
    misc = misc.at[4, :action_dim].set(jnp.exp(-2.0 * log_std))     # 1/std^2
    misc = misc.at[5, :action_dim].set(jnp.exp(log_std))            # std
    misc = misc.at[6, 0].set(jnp.sum(log_std) + action_dim * _LOG_SQRT_2PI)
    return weights, misc


# ---------------------------------------------------------------------------
# In-kernel fused actor|critic MLP (bf16 MXU operands, f32 everything else)
# ---------------------------------------------------------------------------
def _fused_mlp(x_f32, w_ref, misc_ref, in_w, a_dim):
    bf16 = jnp.bfloat16
    w1 = w_ref[0:in_w, :]
    w2 = w_ref[in_w:in_w + FUSED, :]
    w3 = w_ref[in_w + FUSED:in_w + 2 * FUSED, :]
    b1 = misc_ref[0:1, :]
    b2 = misc_ref[1:2, :]
    b3 = misc_ref[2:3, :]
    # Both hidden layers of actor AND critic use tanh -> one tanh over the fused
    # 128-lane activation is exact.
    h = jnp.tanh(jnp.dot(x_f32.astype(bf16), w1,
                         preferred_element_type=jnp.float32) + b1)
    h = jnp.tanh(jnp.dot(h.astype(bf16), w2,
                         preferred_element_type=jnp.float32) + b2)
    out = jnp.dot(h.astype(bf16), w3, preferred_element_type=jnp.float32) + b3
    mean = jnp.tanh(out[:, :a_dim])            # actor head (tanh)
    value = out[:, a_dim:a_dim + 1]            # critic head (linear)
    return mean, value


# ---------------------------------------------------------------------------
# Kernels
# ---------------------------------------------------------------------------
def _evaluate_kernel(xc_ref, w_ref, misc_ref, out_ref, *, s_in, in_w, a_dim):
    xc = xc_ref[...]                                        # [state | action | pad]
    mean, value = _fused_mlp(xc, w_ref, misc_ref, in_w, a_dim)
    action = xc[:, s_in:s_in + a_dim]
    inv_var = misc_ref[4:5, :a_dim]                         # exp(-2*log_std)
    lp_const = misc_ref[6:7, 0:1]                           # sum(log_std)+A*log(sqrt(2pi))
    d = action - mean
    logp = -0.5 * jnp.sum(d * d * inv_var, axis=-1, keepdims=True) - lp_const
    pad_w = out_ref.shape[1] - 2
    parts = [logp, value]
    if pad_w > 0:
        parts.append(jnp.zeros((xc.shape[0], pad_w), jnp.float32))
    out_ref[...] = jnp.concatenate(parts, axis=-1)          # single composed store


def _act_kernel(xc_ref, w_ref, misc_ref, out_ref, *, s_in, in_w, a_dim):
    xc = xc_ref[...]                                        # [state | noise | pad]
    mean, value = _fused_mlp(xc, w_ref, misc_ref, in_w, a_dim)
    noise = xc[:, s_in:s_in + a_dim]                        # ~ N(0,1)
    std = misc_ref[5:6, :a_dim]                             # exp(log_std)
    lp_const = misc_ref[6:7, 0:1]
    action = mean + std * noise                             # reparameterized sample
    # log_prob(action): (action - mean)/std == noise
    logp = -0.5 * jnp.sum(noise * noise, axis=-1, keepdims=True) - lp_const
    pad_w = out_ref.shape[1] - (a_dim + 2)
    parts = [action, logp, value]
    if pad_w > 0:
        parts.append(jnp.zeros((xc.shape[0], pad_w), jnp.float32))
    out_ref[...] = jnp.concatenate(parts, axis=-1)          # single composed store


# ---------------------------------------------------------------------------
# Wrappers
# ---------------------------------------------------------------------------
def _build_combo(state, extra, in_w, b_pad):
    """[state | extra] merged into one padded slab with a single concat + pad."""
    b = state.shape[0]
    combo = jnp.concatenate(
        [state.astype(jnp.float32), extra.astype(jnp.float32)], axis=1)
    pad_r, pad_c = b_pad - b, in_w - combo.shape[1]
    if pad_r or pad_c:
        combo = jnp.pad(combo, ((0, pad_r), (0, pad_c)))
    return combo


def _launch(kernel, combo, weights, misc, tile_b, out_w):
    b_pad, in_w = combo.shape
    return pl.pallas_call(
        kernel,
        out_shape=jax.ShapeDtypeStruct((b_pad, out_w), jnp.float32),
        grid=(b_pad // tile_b,),
        in_specs=[
            pl.BlockSpec((tile_b, in_w), lambda i: (i, 0)),      # streamed batch
            pl.BlockSpec(weights.shape, lambda i: (0, 0)),       # resident weights
            pl.BlockSpec(misc.shape, lambda i: (0, 0)),          # resident misc
        ],
        out_specs=pl.BlockSpec((tile_b, out_w), lambda i: (i, 0)),
        compiler_params=pltpu.CompilerParams(
            dimension_semantics=("parallel",)),
    )(combo, weights, misc)


@jax.jit
def evaluate_packed(weights, misc, state, action):
    """ActorCritic.evaluate(state, action) on pre-packed parameters."""
    b, s_in = state.shape
    a_dim = action.shape[1]
    in_w = weights.shape[0] - 2 * FUSED
    tile_b, b_pad = _tiling(b)
    combo = _build_combo(state, action, in_w, b_pad)
    kernel = functools.partial(_evaluate_kernel, s_in=s_in, in_w=in_w, a_dim=a_dim)
    out = _launch(kernel, combo, weights, misc, tile_b, EVAL_OUT_W)
    logp = out[:b, 0]
    value = out[:b, 1:2]
    # dist.entropy().sum(-1) is batch-independent: computed outside the kernel.
    ent = jnp.broadcast_to(jnp.sum(0.5 + _LOG_SQRT_2PI + misc[3, :a_dim]), (b,))
    return logp, value, ent


@functools.partial(jax.jit, static_argnames=("a_dim",))
def act_packed(weights, misc, state, key, *, a_dim):
    """ActorCritic.act(state) (reparameterized sample) on pre-packed parameters."""
    b, s_in = state.shape
    in_w = weights.shape[0] - 2 * FUSED
    tile_b, b_pad = _tiling(b)
    noise = jax.random.normal(key, (b, a_dim), jnp.float32)
    combo = _build_combo(state, noise, in_w, b_pad)
    out_w = _round_up(a_dim + 2, 8)
    kernel = functools.partial(_act_kernel, s_in=s_in, in_w=in_w, a_dim=a_dim)
    out = _launch(kernel, combo, weights, misc, tile_b, out_w)
    action = out[:b, :a_dim]
    logp = out[:b, a_dim]
    value = out[:b, a_dim + 1:a_dim + 2]
    return action, logp, value


def evaluate(params, state, action):
    """Convenience wrapper (packs every call).  Prefer pack_params + *_packed."""
    weights, misc = pack_params(params, state.shape[1], action.shape[1])
    return evaluate_packed(weights, misc, state, action)


def act(params, state, key):
    a_dim = params["log_std"].shape[1]
    weights, misc = pack_params(params, state.shape[1], a_dim)
    return act_packed(weights, misc, state, key, a_dim=a_dim)


# ---------------------------------------------------------------------------
# Deterministic parameter init (orthogonal w/ tanh gain, zero bias), matching
# ActorCritic.__init__ shapes.  Synthetic init — no checkpoint load.
# ---------------------------------------------------------------------------
def init_params(key, state_dim, action_dim, action_std_init=0.6):
    gain = 5.0 / 3.0  # nn.init.calculate_gain('tanh')

    def orthogonal(k, fan_in, fan_out):
        a = jax.random.normal(k, (max(fan_in, fan_out), min(fan_in, fan_out)),
                              jnp.float32)
        q, r = jnp.linalg.qr(a)
        q = q * jnp.sign(jnp.diagonal(r))
        if fan_in < fan_out:
            q = q.T
        return gain * q[:fan_in, :fan_out]

    ks = jax.random.split(key, 6)
    z = lambda n: jnp.zeros((1, n), jnp.float32)
    return {
        "aw1": orthogonal(ks[0], state_dim, HIDDEN), "ab1": z(HIDDEN),
        "aw2": orthogonal(ks[1], HIDDEN, HIDDEN),    "ab2": z(HIDDEN),
        "aw3": orthogonal(ks[2], HIDDEN, action_dim),"ab3": z(action_dim),
        "cw1": orthogonal(ks[3], state_dim, HIDDEN), "cb1": z(HIDDEN),
        "cw2": orthogonal(ks[4], HIDDEN, HIDDEN),    "cb2": z(HIDDEN),
        "cw3": orthogonal(ks[5], HIDDEN, 1),         "cb3": z(1),
        "log_std": jnp.full((1, action_dim), math.log(action_std_init),
                            jnp.float32),
    }


# Pure-JAX reference of the unfused module (correctness check only).
def _reference(params, state, bf16_matmul):
    if bf16_matmul:
        def dot(a, b):
            return jnp.dot(a.astype(jnp.bfloat16), b.astype(jnp.bfloat16),
                           preferred_element_type=jnp.float32)
    else:
        def dot(a, b):
            return jnp.dot(a, b, precision=jax.lax.Precision.HIGHEST)
    h = jnp.tanh(dot(state, params["aw1"]) + params["ab1"])
    h = jnp.tanh(dot(h, params["aw2"]) + params["ab2"])
    mean = jnp.tanh(dot(h, params["aw3"]) + params["ab3"])
    hc = jnp.tanh(dot(state, params["cw1"]) + params["cb1"])
    hc = jnp.tanh(dot(hc, params["cw2"]) + params["cb2"])
    value = dot(hc, params["cw3"]) + params["cb3"]
    return mean, value


if __name__ == "__main__":
    STATE_DIM, ACTION_DIM, BATCH = 16, 4, 8

    root = jax.random.PRNGKey(0)
    k_param, k_state, k_action, k_noise, k_state2, k_action2 = jax.random.split(root, 6)

    params = init_params(k_param, STATE_DIM, ACTION_DIM, action_std_init=0.6)
    # Pack parameters ONCE and reuse across act / evaluate calls (perf review #7).
    weights, misc = pack_params(params, STATE_DIM, ACTION_DIM)

    state = jax.random.normal(k_state, (BATCH, STATE_DIM), jnp.float32)
    action = jax.random.normal(k_action, (BATCH, ACTION_DIM), jnp.float32)

    # evaluate(state, action) -> (logprob (B,), value (B,1), entropy (B,))
    logp, value, ent = evaluate_packed(weights, misc, state, action)
    # act(state) -> (action (B,A), logprob (B,), value (B,1))
    a_out, a_logp, a_value = act_packed(weights, misc, state, k_noise, a_dim=ACTION_DIM)
    jax.block_until_ready((logp, value, ent, a_out, a_logp, a_value))

    assert logp.shape == (BATCH,) and value.shape == (BATCH, 1) and ent.shape == (BATCH,)
    assert a_out.shape == (BATCH, ACTION_DIM) and a_logp.shape == (BATCH,)
    assert a_value.shape == (BATCH, 1)

    log_std = params["log_std"]
    inv_var = jnp.exp(-2.0 * log_std)
    noise = jax.random.normal(k_noise, (BATCH, ACTION_DIM), jnp.float32)

    # Tight check vs a reference using the SAME bf16-operand matmuls.
    mean_bf, value_bf = _reference(params, state, bf16_matmul=True)
    lp_bf = (-0.5 * (action - mean_bf) ** 2 * inv_var - log_std - _LOG_SQRT_2PI).sum(-1)
    act_bf = mean_bf + jnp.exp(log_std) * noise
    alp_ref = (-0.5 * noise ** 2 - log_std - _LOG_SQRT_2PI).sum(-1)
    ent_ref = jnp.broadcast_to((0.5 + _LOG_SQRT_2PI + log_std).sum(), (BATCH,))

    tight = functools.partial(jnp.allclose, atol=2e-3, rtol=2e-3)
    assert tight(logp, lp_bf), "evaluate logp mismatch"
    assert tight(value, value_bf), "evaluate value mismatch"
    assert jnp.allclose(ent, ent_ref, atol=1e-5), "entropy mismatch"
    assert tight(a_out, act_bf), "act action mismatch"
    assert tight(a_logp, alp_ref), "act logp mismatch"
    assert tight(a_value, value_bf), "act value mismatch"

    # Loose sanity check vs the full-f32 reference (bf16 MXU operands => ~1e-2 err).
    mean_f, value_f = _reference(params, state, bf16_matmul=False)
    lp_f = (-0.5 * (action - mean_f) ** 2 * inv_var - log_std - _LOG_SQRT_2PI).sum(-1)
    loose = functools.partial(jnp.allclose, atol=5e-2, rtol=5e-2)
    assert loose(logp, lp_f) and loose(value, value_f), "bf16 drift too large"

    # Exercise the padded, multi-tile (>=2 grid-step) path as well.
    B2 = 600
    state2 = jax.random.normal(k_state2, (B2, STATE_DIM), jnp.float32)
    action2 = jax.random.normal(k_action2, (B2, ACTION_DIM), jnp.float32)
    logp2, value2, ent2 = evaluate_packed(weights, misc, state2, action2)
    jax.block_until_ready((logp2, value2, ent2))
    mean2_bf, value2_bf = _reference(params, state2, bf16_matmul=True)
    lp2_bf = (-0.5 * (action2 - mean2_bf) ** 2 * inv_var - log_std
              - _LOG_SQRT_2PI).sum(-1)
    assert logp2.shape == (B2,) and value2.shape == (B2, 1) and ent2.shape == (B2,)
    assert tight(logp2, lp2_bf) and tight(value2, value2_bf), "multi-tile mismatch"

    print("KERNEL_OK")
</pallas_src>

<mosaic_0001>
module attributes {stable_mosaic.version = 11 : i64} {
  func.func @_evaluate_kernel(%arg0: i32, %arg1: memref<8x32xf32, #tpu.memory_space<vmem>>, %arg2: memref<288x128xbf16, #tpu.memory_space<vmem>>, %arg3: memref<8x128xf32, #tpu.memory_space<vmem>>, %arg4: memref<8x8xf32, #tpu.memory_space<vmem>>) attributes {dimension_semantics = [#tpu.dimension_semantics<parallel>], iteration_bounds = array<i64: 1>, scalar_prefetch = 0 : i64, scratch_operands = 0 : i64, tpu.core_type = #tpu.core_type<tc>, window_params = [{transform_indices = @transform_0, window_bounds = array<i64: 8, 32>}, {pipeline_mode = #tpu.pipeline_mode<synchronous>, transform_indices = @transform_1, window_bounds = array<i64: 288, 128>}, {pipeline_mode = #tpu.pipeline_mode<synchronous>, transform_indices = @transform_2, window_bounds = array<i64: 8, 128>}, {transform_indices = @transform_3, window_bounds = array<i64: 8, 8>}]} {
    %c0 = arith.constant 0 : index
    %c0_0 = arith.constant 0 : index
    %0 = vector.load %arg1[%c0, %c0_0] : memref<8x32xf32, #tpu.memory_space<vmem>>, vector<8x32xf32>
    %c0_1 = arith.constant 0 : index
    %c0_2 = arith.constant 0 : index
    %1 = vector.load %arg2[%c0_1, %c0_2] : memref<288x128xbf16, #tpu.memory_space<vmem>>, vector<32x128xbf16>
    %c32 = arith.constant 32 : index
    %c0_3 = arith.constant 0 : index
    %2 = vector.load %arg2[%c32, %c0_3] : memref<288x128xbf16, #tpu.memory_space<vmem>>, vector<128x128xbf16>
    %c160 = arith.constant 160 : index
    %c0_4 = arith.constant 0 : index
    %3 = vector.load %arg2[%c160, %c0_4] : memref<288x128xbf16, #tpu.memory_space<vmem>>, vector<128x128xbf16>
    %c0_5 = arith.constant 0 : index
    %c0_6 = arith.constant 0 : index
    %4 = vector.load %arg3[%c0_5, %c0_6] : memref<8x128xf32, #tpu.memory_space<vmem>>, vector<1x128xf32>
    %c1 = arith.constant 1 : index
    %c0_7 = arith.constant 0 : index
    %5 = vector.load %arg3[%c1, %c0_7] : memref<8x128xf32, #tpu.memory_space<vmem>>, vector<1x128xf32>
    %c2 = arith.constant 2 : index
    %c0_8 = arith.constant 0 : index
    %6 = vector.load %arg3[%c2, %c0_8] : memref<8x128xf32, #tpu.memory_space<vmem>>, vector<1x128xf32>
    %7 = arith.truncf %0 : vector<8x32xf32> to vector<8x32xbf16>
    %cst = arith.constant dense<0.000000e+00> : vector<8x128xf32>
    %8 = tpu.matmul %7, %1, %cst {dimension_numbers = #tpu.dot_dimension_numbers<[1], [0], [0], [1], [0, 0, 1, 1], [], []>} : vector<8x32xbf16>, vector<32x128xbf16>, vector<8x128xf32> -> vector<8x128xf32>
    %9 = vector.broadcast %4 : vector<1x128xf32> to vector<8x128xf32>
    %10 = arith.addf %8, %9 : vector<8x128xf32>
    %11 = math.tanh %10 : vector<8x128xf32>
    %12 = arith.truncf %11 : vector<8x128xf32> to vector<8x128xbf16>
    %cst_9 = arith.constant dense<0.000000e+00> : vector<8x128xf32>
    %13 = tpu.matmul %12, %2, %cst_9 {dimension_numbers = #tpu.dot_dimension_numbers<[1], [0], [0], [1], [0, 0, 1, 1], [], []>} : vector<8x128xbf16>, vector<128x128xbf16>, vector<8x128xf32> -> vector<8x128xf32>
    %14 = vector.broadcast %5 : vector<1x128xf32> to vector<8x128xf32>
    %15 = arith.addf %13, %14 : vector<8x128xf32>
    %16 = math.tanh %15 : vector<8x128xf32>
    %17 = arith.truncf %16 : vector<8x128xf32> to vector<8x128xbf16>
    %cst_10 = arith.constant dense<0.000000e+00> : vector<8x128xf32>
    %18 = tpu.matmul %17, %3, %cst_10 {dimension_numbers = #tpu.dot_dimension_numbers<[1], [0], [0], [1], [0, 0, 1, 1], [], []>} : vector<8x128xbf16>, vector<128x128xbf16>, vector<8x128xf32> -> vector<8x128xf32>
    %19 = vector.broadcast %6 : vector<1x128xf32> to vector<8x128xf32>
    %20 = arith.addf %18, %19 : vector<8x128xf32>
    %21 = vector.extract_strided_slice %20 {offsets = [0, 0], sizes = [8, 4], strides = [1, 1]} : vector<8x128xf32> to vector<8x4xf32>
    %22 = math.tanh %21 : vector<8x4xf32>
    %23 = vector.extract_strided_slice %20 {offsets = [0, 4], sizes = [8, 1], strides = [1, 1]} : vector<8x128xf32> to vector<8x1xf32>
    %24 = vector.extract_strided_slice %0 {offsets = [0, 16], sizes = [8, 4], strides = [1, 1]} : vector<8x32xf32> to vector<8x4xf32>
    %c4 = arith.constant 4 : index
    %c0_11 = arith.constant 0 : index
    %25 = vector.load %arg3[%c4, %c0_11] : memref<8x128xf32, #tpu.memory_space<vmem>>, vector<1x4xf32>
    %c6 = arith.constant 6 : index
    %c0_12 = arith.constant 0 : index
    %26 = vector.load %arg3[%c6, %c0_12] : memref<8x128xf32, #tpu.memory_space<vmem>>, vector<1x1xf32>
    %27 = arith.subf %24, %22 : vector<8x4xf32>
    %28 = arith.mulf %27, %27 : vector<8x4xf32>
    %29 = vector.broadcast %25 : vector<1x4xf32> to vector<8x4xf32>
    %30 = arith.mulf %28, %29 : vector<8x4xf32>
    %cst_13 = arith.constant dense<0.000000e+00> : vector<8xf32>
    %31 = vector.multi_reduction <add>, %30, %cst_13 [1] : vector<8x4xf32> to vector<8xf32>
    %32 = vector.shape_cast %31 : vector<8xf32> to vector<8x1xf32>
    %cst_14 = arith.constant -5.000000e-01 : f32
    %33 = vector.broadcast %cst_14 : f32 to vector<8x1xf32>
    %34 = arith.mulf %33, %32 : vector<8x1xf32>
    %35 = vector.broadcast %26 : vector<1x1xf32> to vector<8x1xf32>
    %36 = arith.subf %34, %35 : vector<8x1xf32>
    %cst_15 = arith.constant 0.000000e+00 : f32
    %37 = vector.broadcast %cst_15 : f32 to vector<8x6xf32>
    %38 = tpu.concatenate %36, %23, %37 in 1 : vector<8x1xf32>, vector<8x1xf32>, vector<8x6xf32> -> vector<8x8xf32>
    %c0_16 = arith.constant 0 : index
    %c0_17 = arith.constant 0 : index
    %39 = vector.load %arg4[%c0_16, %c0_17] : memref<8x8xf32, #tpu.memory_space<vmem>>, vector<8x8xf32>
    tpu.vector_store %arg4[%c0_16, %c0_17], %38 {strides = array<i32>} : memref<8x8xf32, #tpu.memory_space<vmem>>, vector<8x8xf32>,
    return
  }
  func.func @transform_0(%arg0: i32) -> (i32, i32) {
    %c0_i32 = arith.constant 0 : i32
    %c0_i32_0 = arith.constant 0 : i32
    return %arg0, %c0_i32 : i32, i32
  }
  func.func @transform_1(%arg0: i32) -> (i32, i32) {
    %c0_i32 = arith.constant 0 : i32
    %c0_i32_0 = arith.constant 0 : i32
    %c0_i32_1 = arith.constant 0 : i32
    return %c0_i32, %c0_i32_0 : i32, i32
  }
  func.func @transform_2(%arg0: i32) -> (i32, i32) {
    %c0_i32 = arith.constant 0 : i32
    %c0_i32_0 = arith.constant 0 : i32
    %c0_i32_1 = arith.constant 0 : i32
    return %c0_i32, %c0_i32_0 : i32, i32
  }
  func.func @transform_3(%arg0: i32) -> (i32, i32) {
    %c0_i32 = arith.constant 0 : i32
    %c0_i32_0 = arith.constant 0 : i32
    return %arg0, %c0_i32 : i32, i32
  }
}

</mosaic_0001>

<bundles_post_ra>
// kernel: evaluate_packed.1
= control target key start
LH: loop header
LB: loop body
LE: loop exit
PB: predicated region body
PF: predicated region fallthrough
CT: control target
= control target key end

     0   :  { %8 = vsyncpa [#allocation3], 0  ;;  %s514_s12 = smov [#allocation2]   ;;  %s604_s0 = inlined_call_operand.vmem [shape: f32[8,32], index: 0, kind: input, shape index: {}]   ;;  %s605_s1 = inlined_call_operand.hbm [shape: bf16[288,128], index: 1, kind: input, shape index: {}]   ;;  %s606_s2 = inlined_call_operand.vmem [shape: f32[8,128], index: 2, kind: input, shape index: {}]   ;;  %s607_s3 = inlined_call_operand.vmem [shape: f32[8,8], index: 3, kind: output, shape index: {}]  }
   0x1   :  { %s16_s13 = sshll.u32 %s514_s12, 4  ;;  %s490_s16 = scalar_lea.hbm %s605_s1, 2304  ;;  %s17_s13 = int_to_ptr.vmem [resolvable:$true] %s16_s13 }
   0x2   :  { %p491_p0 = scmp.ne.s32.totalorder %s605_s1, %s490_s16  ;;  %p494_p1 = scmp.lt.u32.totalorder %s490_s16, %s605_s1 }
   0x4   :  { %p496_p2 = pnand %p494_p1, %p491_p0 }
   0x6   :  { %499 = shalt.err (!%p496_p2)
}
   0x7   :  { %s500_s21 = scalar_lea.vmem %s17_s13, 2304  ;;  %p505_p4 = scmp.lt.s32.totalorder %s17_s13, %s17_s13 }
   0x8   :  { %p501_p3 = scmp.ne.s32.totalorder %s17_s13, %s500_s21  ;;  %p506_p5 = scmp.lt.s32.totalorder %s500_s21, %s500_s21 }
   0xa   :  { %p507_p6 = por %p506_p5, %p505_p4 }
   0xc   :  { %p508_p7 = pnand %p507_p6, %p501_p3 }
   0xe   :  { %511 = shalt.err (!%p508_p7)
}
   0xf   :  { %s515_s22 = smov 64   ;;  %s516_s23 = smov 4  }
  0x10   :  { %22 = dma.hbm_to_vmem [thread:$0]  %s605_s1, 2304, %s17_s13, [#allocation3], %s515_s22, %s515_s22, %s516_s23  }
  0x11   :  { %512 = dma.done.wait [#allocation3], 2304  }
  0x12   :  { %513 = vsyncadd [#allocation3], 4294964992  ;;  %v517_v0 = vmov 0.0   ;;  %vm518_vm0 = vmmov 0   ;;  %v466_v1 = vld [vmem:[#allocation2] sm:$0xff]   ;;  %v467_v2 = vld [vmem:[#allocation2 + $0x8] sm:$0xff]  }
  0x13   :  { %410 = vmatprep.subr.bf16.mxu0 %v517_v0  ;;  %414 = vmatprep.mubr.msk.bf16.mxu0 %vm518_vm0, %v517_v0  ;;  %v563_v3 = vld [vmem:[%s604_s0] sm:$0xff]  ;;  %v468_v4 = vld [vmem:[#allocation2 + $0x10] sm:$0xff]   ;;  %v469_v6 = vld [vmem:[#allocation2 + $0x18] sm:$0xff]   ;;  %vm86_vm1 = vcmask 261120   ;;  %s519_s5 = smov 16   ;;  %s520_s8 = smov 125  }
  0x14   :  { %418 = vmatprep.subr.bf16.mxu1 %v517_v0  ;;  %434 = vmatprep.mubr.msk.bf16.mxu1 %vm518_vm0, %v517_v0  ;;  %v69_v5 = vpack.c.bf16 %v563_v3, %v563_v3  ;;  %v470_v7 = vld [vmem:[#allocation2 + $0x20] sm:$0xff]   ;;  %v471_v8 = vld [vmem:[#allocation2 + $0x28] sm:$0xff]   ;;  %v472_v9 = vld [vmem:[#allocation2 + $0x30] sm:$0xff]   ;;  %s521_s9 = smov 112   ;;  %vm340_vm2 = vcmask 31744   ;;  %vm354_vm3 = vcmask 7168  }
  0x15   :  { %411 = vmatpush3.bf16.msra.mxu0 %v466_v1  ;;  %419 = vmatpush3.bf16.msra.mxu1 %v468_v4  ;;  %v473_v10 = vld [vmem:[#allocation2 + $0x38] sm:$0xff]   ;;  %v474_v11 = vld [vmem:[#allocation2 + $0x40] sm:$0xff]   ;;  %v475_v12 = vld [vmem:[#allocation2 + $0x48] sm:$0xff]   ;;  %vm356_vm4 = vcmask 15360   ;;  %vm358_vm5 = vcmask 64512  }
  0x16   :  { %412 = vmatprep.subr.bf16.mxu0 %v517_v0  ;;  %420 = vmatprep.subr.bf16.mxu1 %v517_v0  ;;  %v476_v13 = vld [vmem:[#allocation2 + $0x50] sm:$0xff]   ;;  %v477_v14 = vld [vmem:[#allocation2 + $0x58] sm:$0xff]   ;;  %v478_v15 = vld [vmem:[#allocation2 + $0x60] sm:$0xff]  }
  0x17   :  { %v479_v16 = vld [vmem:[#allocation2 + $0x68] sm:$0xff]   ;;  %v365_v17 = vld [vmem:[%s606_s2] ss:$0 sm:$0xff]  ;;  %v480_v25 = vld [vmem:[#allocation2 + $0x70] sm:$0xff]  }
  0x18   :  { %v481_v26 = vld [vmem:[#allocation2 + $0x78] sm:$0xff]   ;;  %v482_v27 = vld [vmem:[#allocation2 + $0x80] sm:$0xff]   ;;  %v483_v28 = vld [vmem:[#allocation2 + $0x88] sm:$0xff]  }
  0x19   :  { %413 = vmatpush3.bf16.msra.mxu0 %v467_v2  ;;  %421 = vmatpush3.bf16.msra.mxu1 %v469_v6  ;;  %v369_v29 = vld [vmem:[%s606_s2 + $0x1] ss:$0 sm:$0xff]  ;;  %v378_v37 = vld [vmem:[%s606_s2 + $0x2] ss:$0 sm:$0xff]  ;;  %v387_v44 = vld [vmem:[%s606_s2 + $0x4] ss:$0 sm:$0xff] }
  0x1a   :  { %438 = vmatprep.subr.bf16.mxu0 %v517_v0  ;;  %422 = vmatprep.subr.bf16.mxu1 %v517_v0  ;;  %v388_v52 = vld [vmem:[%s606_s2 + $0x6] ss:$0 sm:$0xff] }
  0x1c   :  { %415 = vmatmul.mubr.msk.bf16.vlgmr.msra.gmra.mrb[0].mxu0 %vm86_vm1, %v69_v5 }
  0x1d   :  { %454 = vmatprep.mubr.msk.bf16.mxu0 %vm518_vm0, %v517_v0  ;;  %423 = vmatpush3.bf16.msra.mxu1 %v470_v7 }
  0x1e   :  { %424 = vmatprep.subr.bf16.mxu1 %v517_v0  ;;  %439 = vmatpush3.bf16.msra.mxu0 %v476_v13 }
  0x1f   :  { %440 = vmatprep.subr.bf16.mxu0 %v517_v0 }
  0x21   :  { %425 = vmatpush3.bf16.msra.mxu1 %v471_v8 }
  0x22   :  { %426 = vmatprep.subr.bf16.mxu1 %v517_v0  ;;  %441 = vmatpush3.bf16.msra.mxu0 %v477_v14 }
  0x23   :  { %442 = vmatprep.subr.bf16.mxu0 %v517_v0 }
  0x25   :  { %427 = vmatpush3.bf16.msra.mxu1 %v472_v9 }
  0x26   :  { %428 = vmatprep.subr.bf16.mxu1 %v517_v0  ;;  %443 = vmatpush3.bf16.msra.mxu0 %v478_v15 }
  0x27   :  { %444 = vmatprep.subr.bf16.mxu0 %v517_v0 }
  0x29   :  { %429 = vmatpush3.bf16.msra.mxu1 %v473_v10 }
  0x2a   :  { %430 = vmatprep.subr.bf16.mxu1 %v517_v0  ;;  %445 = vmatpush3.bf16.msra.mxu0 %v479_v16 }
  0x2b   :  { %446 = vmatprep.subr.bf16.mxu0 %v517_v0 }
  0x2d   :  { %431 = vmatpush3.bf16.msra.mxu1 %v474_v11 }
  0x2e   :  { %432 = vmatprep.subr.bf16.mxu1 %v517_v0  ;;  %447 = vmatpush3.bf16.msra.mxu0 %v480_v25 }
  0x2f   :  { %448 = vmatprep.subr.bf16.mxu0 %v517_v0 }
  0x31   :  { %433 = vmatpush3.bf16.msra.mxu1 %v475_v12 }
  0x32   :  { %449 = vmatpush3.bf16.msra.mxu0 %v481_v26 }
  0x33   :  { %450 = vmatprep.subr.bf16.mxu0 %v517_v0 }
  0x36   :  { %451 = vmatpush3.bf16.msra.mxu0 %v482_v27 }
  0x37   :  { %452 = vmatprep.subr.bf16.mxu0 %v517_v0 }
  0x3a   :  { %453 = vmatpush3.bf16.msra.mxu0 %v483_v28 }
  0xef   :  { %v124_v18 = vpop.f32.mrb[0].mxu0 }
  0xf0   :  { %v125_v19 = vadd.f32 %v365_v17, %v124_v18  ;;  %v416_v20 = vpop.f32.mrb[1].mxu0 }
  0xf1   :  { %v127_v21 = vpop.f32.mrb[2].mxu0 }
  0xf2   :  { %484 = vtanh.f32 %v125_v19  ;;  %v417_v22 = vpop.f32.mrb[3].mxu0 }
  0xfc   :  { %v485_v23 = vpop.eup %484 }
  0xfd   :  { %v131_v24 = vpack.c.bf16 %v485_v23, %v485_v23 }
  0xff   :  { %435 = vmatmul.mubr.bf16.vlgmr.msra.gmra.mrb[0].mxu1 %v131_v24 }
 0x1d2   :  { %v218_v30 = vpop.f32.mrb[0].mxu1 }
 0x1d3   :  { %v219_v31 = vadd.f32 %v369_v29, %v218_v30  ;;  %v436_v32 = vpop.f32.mrb[1].mxu1 }
 0x1d4   :  { %v221_v33 = vpop.f32.mrb[2].mxu1 }
 0x1d5   :  { %486 = vtanh.f32 %v219_v31  ;;  %v437_v34 = vpop.f32.mrb[3].mxu1 }
 0x1df   :  { %v487_v35 = vpop.eup %486 }
 0x1e0   :  { %v225_v36 = vpack.c.bf16 %v487_v35, %v487_v35 }
 0x1e2   :  { %455 = vmatmul.mubr.bf16.vlgmr.msra.gmra.mrb[4].mxu0 %v225_v36 }
 0x2b5   :  { %v312_v38 = vpop.f32.mrb[4].mxu0 }
 0x2b6   :  { %v313_v39 = vadd.f32 %v378_v37, %v312_v38  ;;  %v456_v40 = vpop.f32.mrb[5].mxu0 }
 0x2b7   :  { %v315_v41 = vpop.f32.mrb[6].mxu0 }
 0x2b8   :  { %488 = vtanh.f32 %v313_v39  ;;  %v457_v42 = vpop.f32.mrb[7].mxu0 }
 0x2c2   :  { %v489_v43 = vpop.eup %488 }
 0x2c3   :  { %322 = vrot.lane.b32.xlu0 %v489_v43, %s519_s5 }
 0x2c7   :  { %332 = vrot.lane.b32.xlu0 %v387_v44, %s519_s5 }
 0x2cb   :  { %351 = vrot.lane.b32.xlu0 %v313_v39, %s520_s8 }
 0x335   :  { %v323_v45 = vpop.permute.xlu0 %322 }
 0x336   :  { %v325_v46 = vsub.f32 %v563_v3, %v323_v45 }
 0x338   :  { %v326_v47 = vmul.f32 %v325_v46, %v325_v46 }
 0x339   :  { %v333_v48 = vpop.permute.xlu0 %332 }
 0x33a   :  { %v335_v49 = vmul.f32 %v333_v48, %v326_v47 }
 0x33c   :  { %337 = vrot.lane.b32.xlu1 %v335_v49, %s521_s9 }
 0x33d   :  { %v352_v56 = vpop.permute.xlu0 %351 }
 0x3ae   :  { %v338_v50 = vpop.permute.xlu1 %337 }
 0x3af   :  { %v341_v51 = vsel %vm340_vm2, %v338_v50, 0.0 }
 0x3b0   :  { %342 = vadd.xlane.f32.xlu1 %v341_v51 }
 0x43d   :  { %v343_v53 = vpop.xlane.xlu1 %342 }
 0x43e   :  { %v344_v54 = vmul.f32 -0.5, %v343_v53 }
 0x440   :  { %v349_v55 = vsub.f32 %v344_v54, %v388_v52 }
 0x442   :  { %v355_v57 = vsel %vm354_vm3, %v349_v55, %v352_v56 }
 0x443   :  { %v357_v58 = vsel %vm356_vm4, %v355_v57, 0.0 }
 0x444   :  { %359 = vst.msk [vmem:[%s607_s3] sm:$0xff] %vm358_vm5, %v357_v58 }
 0x445   :  { %364 = vsyncpa [#allocation3], 1 }

</bundles_post_ra>
